<compile_context>
chip_gen: v7x
topology: tpu7x:2x2x1
jax: 0.10.0
libtpu: 0.0.40
codegen_flags: <defaults>
</compile_context>

<pallas_src>
import math

import jax
import jax.numpy as jnp
from jax.experimental import pallas as pl
from jax.experimental.pallas import tpu as pltpu

# ---- small "DistilBERT-like" config (synthetic; no checkpoint loading) ----
VOCAB = 100
MAX_POS = 32
HIDDEN = 64          # stands in for 768
N_HEADS = 2          # stands in for 12
HEAD_DIM = HIDDEN // N_HEADS
FFN_DIM = 128        # stands in for 3072
N_LAYERS = 2         # stands in for 6
EMBED_DIM = 32       # projection output (module default 128)
EMBED_PAD = 128      # lane-dense output store; sliced back to EMBED_DIM in wrapper
HEAD_PAD = 128       # lane stride of each per-head q/k/v slot in the packed QKV
LN_EPS = 1e-12       # DistilBERT LayerNorm eps


# --------------------------- fused encoder kernel ----------------------------

def _encoder_kernel(x_hbm_ref, mask2d_ref,
                    wqkv_ref, bqkv_ref, wo_ref, bo_ref, ln1_ref,
                    w1_ref, b1_ref, w2_ref, b2_ref, ln2_ref,
                    projw_ref, projb_ref,
                    out_ref,
                    h_ref, ctx_ref, dma_sem):
    """One grid step == one transformer layer.  h_ref (VMEM scratch) carries the
    (B*S, H) residual stream across layers; output is written on the last step."""
    layer = pl.program_id(0)
    bsz = out_ref.shape[0]
    seq = h_ref.shape[0] // bsz

    def layernorm(x, gb):                       # gb: (2, H) -> row0 gamma, row1 beta
        g = gb[0:1, :]
        beta = gb[1:2, :]
        mu = jnp.mean(x, axis=-1, keepdims=True)
        var = jnp.mean(jnp.square(x - mu), axis=-1, keepdims=True)
        return (x - mu) * jax.lax.rsqrt(var + LN_EPS) * g + beta

    # ---- layer 0: DMA the (already embedding-LayerNormed) activations HBM -> scratch ----
    @pl.when(layer == 0)
    def _():
        cp = pltpu.make_async_copy(x_hbm_ref, h_ref, dma_sem)
        cp.start()
        cp.wait()

    h = h_ref[...]                              # (B*S, H) f32 residual stream
    mask2d = mask2d_ref[...]                    # (B*S, B*S) block-diagonal + padding mask

    # ---- fused QKV projection; per-head q/k/v live in 128-lane-aligned slots ----
    qkv = jnp.dot(h.astype(jnp.bfloat16), wqkv_ref[...],
                  preferred_element_type=jnp.float32) + bqkv_ref[...]   # (B*S, NH*3*128)

    # ---- self-attention over all B*S rows per head (block-diagonal mask handles
    #      batch separation + key padding).  Only a short static head loop remains;
    #      at production B*S switch to per-sequence / flash-style tiling. ----
    for hd in range(N_HEADS):
        base = hd * 3 * HEAD_PAD
        q = qkv[:, base:base + HEAD_PAD]                          # (B*S, 128), pre-scaled
        k = qkv[:, base + HEAD_PAD:base + 2 * HEAD_PAD]
        v = qkv[:, base + 2 * HEAD_PAD:base + 3 * HEAD_PAD]
        s = jax.lax.dot_general(q, k, (((1,), (1,)), ((), ())),
                                preferred_element_type=jnp.float32)  # (B*S, B*S)
        s = s + mask2d
        s = s - jnp.max(s, axis=-1, keepdims=True)
        p = jnp.exp(s)
        p = p * pl.reciprocal(jnp.sum(p, axis=-1, keepdims=True), approx=True)
        ctx_h = jnp.dot(p, v, preferred_element_type=jnp.float32)    # (B*S, 128)
        ctx_ref[:, hd * HEAD_PAD:(hd + 1) * HEAD_PAD] = ctx_h.astype(jnp.bfloat16)

    # ---- attention output projection (all heads in one matmul) + residual + LN ----
    attn_out = jnp.dot(ctx_ref[...], wo_ref[...],
                       preferred_element_type=jnp.float32) + bo_ref[...]
    h = layernorm(attn_out + h, ln1_ref[...])

    # ---- FFN (fused two matmuls) + residual + LN ----
    ff = jnp.dot(h.astype(jnp.bfloat16), w1_ref[...],
                 preferred_element_type=jnp.float32) + b1_ref[...]
    ff = jax.nn.gelu(ff)  # TODO(synk): HF DistilBERT uses exact erf GELU; tanh approx here
    ff = jnp.dot(ff.astype(jnp.bfloat16), w2_ref[...],
                 preferred_element_type=jnp.float32) + b2_ref[...]
    h = layernorm(ff + h, ln2_ref[...])
    h_ref[...] = h

    # ---- last layer: CLS pooling (strided row gather) + final projection ----
    @pl.when(layer == pl.num_programs(0) - 1)
    def _():
        cls = h_ref[pl.ds(0, bsz, stride=seq), :]                 # rows 0, S, 2S, ...
        out_ref[...] = (jnp.dot(cls.astype(jnp.bfloat16), projw_ref[...],
                                preferred_element_type=jnp.float32)
                        + projb_ref[...]).astype(out_ref.dtype)


# --------------------------- parameters --------------------------------------

def init_params(key):
    def nrm(k, shape, scale=0.02):
        return scale * jax.random.normal(k, shape, dtype=jnp.float32)

    keys = iter(jax.random.split(key, 4 + N_LAYERS * 6))
    params = {
        "word_emb": nrm(next(keys), (VOCAB, HIDDEN)),
        "pos_emb": nrm(next(keys), (MAX_POS, HIDDEN)),
        "emb_ln_g": jnp.ones((HIDDEN,), jnp.float32),
        "emb_ln_b": jnp.zeros((HIDDEN,), jnp.float32),
        "proj_w": nrm(next(keys), (EMBED_DIM, HIDDEN)),   # torch nn.Linear layout (out, in)
        "proj_b": jnp.zeros((EMBED_DIM,), jnp.float32),
        "layers": [],
    }
    for _ in range(N_LAYERS):
        params["layers"].append({
            "wq": nrm(next(keys), (HIDDEN, HIDDEN)), "bq": jnp.zeros((HIDDEN,), jnp.float32),
            "wk": nrm(next(keys), (HIDDEN, HIDDEN)), "bk": jnp.zeros((HIDDEN,), jnp.float32),
            "wv": nrm(next(keys), (HIDDEN, HIDDEN)), "bv": jnp.zeros((HIDDEN,), jnp.float32),
            "wo": nrm(next(keys), (HIDDEN, HIDDEN)), "bo": jnp.zeros((HIDDEN,), jnp.float32),
            "ln1_g": jnp.ones((HIDDEN,), jnp.float32), "ln1_b": jnp.zeros((HIDDEN,), jnp.float32),
            "w1": nrm(next(keys), (FFN_DIM, HIDDEN)), "b1": jnp.zeros((FFN_DIM,), jnp.float32),
            "w2": nrm(next(keys), (HIDDEN, FFN_DIM)), "b2": jnp.zeros((HIDDEN,), jnp.float32),
            "ln2_g": jnp.ones((HIDDEN,), jnp.float32), "ln2_b": jnp.zeros((HIDDEN,), jnp.float32),
        })
    return params


def pack_params(params):
    """One-time host-side packing:
      * nn.Linear weights pre-transposed to (K, N),
      * QKV fused with 1/sqrt(D) folded into Q, each head's q/k/v section placed
        in its own 128-lane-aligned slot (zero-padded),
      * Wo row-padded to match the padded context layout,
      * projection column-padded to 128 lanes,
      * per-layer weights stacked along a leading layer axis, matmul weights bf16."""
    scale = 1.0 / math.sqrt(HEAD_DIM)
    layers = params["layers"]

    def pack_qkv_w(l):
        wq_t = l["wq"].T * scale
        wk_t = l["wk"].T
        wv_t = l["wv"].T
        w = jnp.zeros((HIDDEN, N_HEADS * 3 * HEAD_PAD), jnp.float32)
        for hd in range(N_HEADS):
            base = hd * 3 * HEAD_PAD
            sl = slice(hd * HEAD_DIM, (hd + 1) * HEAD_DIM)
            w = w.at[:, base:base + HEAD_DIM].set(wq_t[:, sl])
            w = w.at[:, base + HEAD_PAD:base + HEAD_PAD + HEAD_DIM].set(wk_t[:, sl])
            w = w.at[:, base + 2 * HEAD_PAD:base + 2 * HEAD_PAD + HEAD_DIM].set(wv_t[:, sl])
        return w

    def pack_qkv_b(l):
        b = jnp.zeros((1, N_HEADS * 3 * HEAD_PAD), jnp.float32)
        for hd in range(N_HEADS):
            base = hd * 3 * HEAD_PAD
            sl = slice(hd * HEAD_DIM, (hd + 1) * HEAD_DIM)
            b = b.at[0, base:base + HEAD_DIM].set(l["bq"][sl] * scale)
            b = b.at[0, base + HEAD_PAD:base + HEAD_PAD + HEAD_DIM].set(l["bk"][sl])
            b = b.at[0, base + 2 * HEAD_PAD:base + 2 * HEAD_PAD + HEAD_DIM].set(l["bv"][sl])
        return b

    def pack_wo(l):
        wo_t = l["wo"].T                                   # (H_in = ctx hidden, H_out)
        w = jnp.zeros((N_HEADS * HEAD_PAD, HIDDEN), jnp.float32)
        for hd in range(N_HEADS):
            w = w.at[hd * HEAD_PAD:hd * HEAD_PAD + HEAD_DIM, :].set(
                wo_t[hd * HEAD_DIM:(hd + 1) * HEAD_DIM, :])
        return w

    def stack(fn):
        return jnp.stack([fn(l) for l in layers], axis=0)

    proj_w_pad = jnp.zeros((HIDDEN, EMBED_PAD), jnp.float32)
    proj_w_pad = proj_w_pad.at[:, :EMBED_DIM].set(params["proj_w"].T)
    proj_b_pad = jnp.zeros((1, EMBED_PAD), jnp.float32)
    proj_b_pad = proj_b_pad.at[0, :EMBED_DIM].set(params["proj_b"])

    return {
        "word_emb": params["word_emb"],
        "pos_emb": params["pos_emb"],
        "emb_ln_g": params["emb_ln_g"],
        "emb_ln_b": params["emb_ln_b"],
        "wqkv": stack(pack_qkv_w).astype(jnp.bfloat16),       # (L, H, NH*3*128)
        "bqkv": stack(pack_qkv_b),                            # (L, 1, NH*3*128)
        "wo": stack(pack_wo).astype(jnp.bfloat16),            # (L, NH*128, H)
        "bo": stack(lambda l: l["bo"][None, :]),              # (L, 1, H)
        "ln1": stack(lambda l: jnp.stack([l["ln1_g"], l["ln1_b"]], axis=0)),   # (L, 2, H)
        "w1": stack(lambda l: l["w1"].T).astype(jnp.bfloat16),                 # (L, H, F)
        "b1": stack(lambda l: l["b1"][None, :]),                               # (L, 1, F)
        "w2": stack(lambda l: l["w2"].T).astype(jnp.bfloat16),                 # (L, F, H)
        "b2": stack(lambda l: l["b2"][None, :]),                               # (L, 1, H)
        "ln2": stack(lambda l: jnp.stack([l["ln2_g"], l["ln2_b"]], axis=0)),   # (L, 2, H)
        "proj_w": proj_w_pad.astype(jnp.bfloat16),            # (H, 128)
        "proj_b": proj_b_pad,                                 # (1, 128)
    }


# --------------------------- forward pass -------------------------------------

def distilbert_query_encoder(packed, input_ids, attention_mask):
    """input_ids/attention_mask: (B, S) int32.  Returns (B, EMBED_DIM) f32."""
    b, s = input_ids.shape

    # Embedding gather + embedding LayerNorm stay in plain JAX (gather-bound);
    # only one resident (B*S, H) activation slab then lives inside the kernel.
    x = (jnp.take(packed["word_emb"], input_ids, axis=0)
         + packed["pos_emb"][:s][None, :, :]).reshape(b * s, HIDDEN)
    mu = jnp.mean(x, axis=-1, keepdims=True)
    var = jnp.mean(jnp.square(x - mu), axis=-1, keepdims=True)
    x = (x - mu) * jax.lax.rsqrt(var + LN_EPS) * packed["emb_ln_g"] + packed["emb_ln_b"]

    # Block-diagonal additive attention mask over all B*S rows:
    # allowed iff same sequence AND key position is not padding.
    seg = jnp.repeat(jnp.arange(b), s)                               # (B*S,)
    key_valid = attention_mask.astype(jnp.float32).reshape(b * s)    # (B*S,)
    allowed = (seg[:, None] == seg[None, :]) & (key_valid[None, :] > 0.0)
    mask2d = jnp.where(allowed, 0.0, -1e9).astype(jnp.float32)       # (B*S, B*S)

    full2d = lambda shape: pl.BlockSpec(shape, lambda l: (0, 0))
    per_layer = lambda shape: pl.BlockSpec((pl.Squeezed(),) + shape, lambda l: (l, 0, 0))

    out = pl.pallas_call(
        _encoder_kernel,
        grid=(N_LAYERS,),
        in_specs=[
            pl.BlockSpec(memory_space=pl.ANY),            # x stays in HBM; DMA'd once at layer 0
            full2d((b * s, b * s)),                       # block-diagonal additive mask
            per_layer((HIDDEN, N_HEADS * 3 * HEAD_PAD)),  # wqkv (head-padded, lane-aligned)
            per_layer((1, N_HEADS * 3 * HEAD_PAD)),       # bqkv
            per_layer((N_HEADS * HEAD_PAD, HIDDEN)),      # wo (row-padded)
            per_layer((1, HIDDEN)),                       # bo
            per_layer((2, HIDDEN)),                       # ln1
            per_layer((HIDDEN, FFN_DIM)),                 # w1
            per_layer((1, FFN_DIM)),                      # b1
            per_layer((FFN_DIM, HIDDEN)),                 # w2
            per_layer((1, HIDDEN)),                       # b2
            per_layer((2, HIDDEN)),                       # ln2
            full2d((HIDDEN, EMBED_PAD)),                  # proj_w (lane-padded)
            full2d((1, EMBED_PAD)),                       # proj_b
        ],
        out_specs=pl.BlockSpec((b, EMBED_PAD), lambda l: (0, 0)),
        out_shape=jax.ShapeDtypeStruct((b, EMBED_PAD), jnp.float32),
        scratch_shapes=[
            pltpu.VMEM((b * s, HIDDEN), jnp.float32),               # residual stream
            pltpu.VMEM((b * s, N_HEADS * HEAD_PAD), jnp.bfloat16),  # per-head context slab
            pltpu.SemaphoreType.DMA,                                # layer-0 activation DMA
        ],
        compiler_params=pltpu.CompilerParams(
            # layer axis is sequential (activation carried in scratch)
            dimension_semantics=("arbitrary",),
            vmem_limit_bytes=32 * 1024 * 1024,
        ),
    )(x, mask2d,
      packed["wqkv"], packed["bqkv"], packed["wo"], packed["bo"], packed["ln1"],
      packed["w1"], packed["b1"], packed["w2"], packed["b2"], packed["ln2"],
      packed["proj_w"], packed["proj_b"])

    return out[:, :EMBED_DIM]


# --------------------------- main ----------------------------------------------

if __name__ == "__main__":
    # TODO(synk): DistilBertTokenizer string processing has no Pallas/JAX
    # equivalent; inputs are deterministic pre-tokenized ids + attention mask.
    B, S = 2, 8
    key = jax.random.PRNGKey(0)
    k_params, k_ids = jax.random.split(key)

    params = init_params(k_params)
    packed = pack_params(params)     # one-time host-side weight packing

    body = jax.random.randint(k_ids, (B, S), 2, VOCAB, dtype=jnp.int32)
    input_ids = body.at[:, 0].set(1)            # CLS token id = 1
    input_ids = input_ids.at[1, 6:].set(0)      # pad tokens for sample 1
    attention_mask = jnp.ones((B, S), jnp.int32).at[1, 6:].set(0)

    fwd = jax.jit(distilbert_query_encoder)
    query_emb = fwd(packed, input_ids, attention_mask)
    jax.block_until_ready(query_emb)

    assert query_emb.shape == (B, EMBED_DIM)
    assert query_emb.dtype == jnp.float32
    assert bool(jnp.all(jnp.isfinite(query_emb)))
    print("KERNEL_OK")
</pallas_src>

<mosaic_0001>
module attributes {stable_mosaic.version = 11 : i64} {
  func.func @_encoder_kernel(%arg0: i32, %arg1: memref<16x64xf32, #tpu.memory_space<any>>, %arg2: memref<16x16xf32, #tpu.memory_space<vmem>>, %arg3: memref<1x64x768xbf16, #tpu.memory_space<vmem>>, %arg4: memref<1x1x768xf32, #tpu.memory_space<vmem>>, %arg5: memref<1x256x64xbf16, #tpu.memory_space<vmem>>, %arg6: memref<1x1x64xf32, #tpu.memory_space<vmem>>, %arg7: memref<1x2x64xf32, #tpu.memory_space<vmem>>, %arg8: memref<1x64x128xbf16, #tpu.memory_space<vmem>>, %arg9: memref<1x1x128xf32, #tpu.memory_space<vmem>>, %arg10: memref<1x128x64xbf16, #tpu.memory_space<vmem>>, %arg11: memref<1x1x64xf32, #tpu.memory_space<vmem>>, %arg12: memref<1x2x64xf32, #tpu.memory_space<vmem>>, %arg13: memref<64x128xbf16, #tpu.memory_space<vmem>>, %arg14: memref<1x128xf32, #tpu.memory_space<vmem>>, %arg15: memref<2x128xf32, #tpu.memory_space<vmem>>, %arg16: memref<16x64xf32, #tpu.memory_space<vmem>>, %arg17: memref<16x256xbf16, #tpu.memory_space<vmem>>, %arg18: memref<!tpu.dma_semaphore, #tpu.memory_space<semaphore_mem>>) attributes {dimension_semantics = [#tpu.dimension_semantics<arbitrary>], iteration_bounds = array<i64: 2>, scalar_prefetch = 0 : i64, scratch_operands = 3 : i64, tpu.core_type = #tpu.core_type<tc>, window_params = [{}, {pipeline_mode = #tpu.pipeline_mode<synchronous>, transform_indices = @transform_1, window_bounds = array<i64: 16, 16>}, {transform_indices = @transform_2, window_bounds = array<i64: 1, 64, 768>}, {transform_indices = @transform_3, window_bounds = array<i64: 1, 1, 768>}, {transform_indices = @transform_4, window_bounds = array<i64: 1, 256, 64>}, {transform_indices = @transform_5, window_bounds = array<i64: 1, 1, 64>}, {transform_indices = @transform_6, window_bounds = array<i64: 1, 2, 64>}, {transform_indices = @transform_7, window_bounds = array<i64: 1, 64, 128>}, {transform_indices = @transform_8, window_bounds = array<i64: 1, 1, 128>}, {transform_indices = @transform_9, window_bounds = array<i64: 1, 128, 64>}, {transform_indices = @transform_10, window_bounds = array<i64: 1, 1, 64>}, {transform_indices = @transform_11, window_bounds = array<i64: 1, 2, 64>}, {pipeline_mode = #tpu.pipeline_mode<synchronous>, transform_indices = @transform_12, window_bounds = array<i64: 64, 128>}, {pipeline_mode = #tpu.pipeline_mode<synchronous>, transform_indices = @transform_13, window_bounds = array<i64: 1, 128>}, {pipeline_mode = #tpu.pipeline_mode<synchronous>, transform_indices = @transform_14, window_bounds = array<i64: 2, 128>}]} {
    %c0_i32 = arith.constant 0 : i32
    %0 = arith.cmpi eq, %arg0, %c0_i32 : i32
    %1 = arith.extui %0 : i1 to i32
    %c0_i32_0 = arith.constant 0 : i32
    %2 = arith.cmpi ne, %1, %c0_i32_0 : i32
    scf.if %2 {
      tpu.enqueue_dma source(%arg1 : memref<16x64xf32, #tpu.memory_space<any>>) target(%arg16 : memref<16x64xf32, #tpu.memory_space<vmem>>) target_semaphore(%arg18 : memref<!tpu.dma_semaphore, #tpu.memory_space<semaphore_mem>>)
      tpu.wait_dma2 semaphore(%arg18 : memref<!tpu.dma_semaphore, #tpu.memory_space<semaphore_mem>>) src(%arg1 : memref<16x64xf32, #tpu.memory_space<any>>) dst(%arg16 : memref<16x64xf32, #tpu.memory_space<vmem>>)
    } else {
    }
    %c0 = arith.constant 0 : index
    %c0_1 = arith.constant 0 : index
    %3 = vector.load %arg16[%c0, %c0_1] : memref<16x64xf32, #tpu.memory_space<vmem>>, vector<16x64xf32>
    %c0_2 = arith.constant 0 : index
    %c0_3 = arith.constant 0 : index
    %4 = vector.load %arg2[%c0_2, %c0_3] : memref<16x16xf32, #tpu.memory_space<vmem>>, vector<16x16xf32>
    %5 = arith.truncf %3 : vector<16x64xf32> to vector<16x64xbf16>
    %c0_4 = arith.constant 0 : index
    %c0_5 = arith.constant 0 : index
    %c0_6 = arith.constant 0 : index
    %6 = vector.load %arg3[%c0_4, %c0_5, %c0_6] : memref<1x64x768xbf16, #tpu.memory_space<vmem>>, vector<1x64x768xbf16>
    %7 = vector.shape_cast %6 : vector<1x64x768xbf16> to vector<64x768xbf16>
    %cst = arith.constant dense<0.000000e+00> : vector<16x768xf32>
    %8 = tpu.matmul %5, %7, %cst {dimension_numbers = #tpu.dot_dimension_numbers<[1], [0], [0], [1], [0, 0, 1, 1], [], []>} : vector<16x64xbf16>, vector<64x768xbf16>, vector<16x768xf32> -> vector<16x768xf32>
    %c0_7 = arith.constant 0 : index
    %c0_8 = arith.constant 0 : index
    %c0_9 = arith.constant 0 : index
    %9 = vector.load %arg4[%c0_7, %c0_8, %c0_9] : memref<1x1x768xf32, #tpu.memory_space<vmem>>, vector<1x1x768xf32>
    %10 = vector.shape_cast %9 : vector<1x1x768xf32> to vector<1x768xf32>
    %11 = vector.broadcast %10 : vector<1x768xf32> to vector<16x768xf32>
    %12 = arith.addf %8, %11 : vector<16x768xf32>
    %13 = vector.extract_strided_slice %12 {offsets = [0, 0], sizes = [16, 128], strides = [1, 1]} : vector<16x768xf32> to vector<16x128xf32>
    %14 = vector.extract_strided_slice %12 {offsets = [0, 128], sizes = [16, 128], strides = [1, 1]} : vector<16x768xf32> to vector<16x128xf32>
    %15 = vector.extract_strided_slice %12 {offsets = [0, 256], sizes = [16, 128], strides = [1, 1]} : vector<16x768xf32> to vector<16x128xf32>
    %cst_10 = arith.constant dense<0.000000e+00> : vector<16x16xf32>
    %16 = tpu.matmul %13, %14, %cst_10 {dimension_numbers = #tpu.dot_dimension_numbers<[1], [1], [0], [0], [0, 0, 1, 0], [], []>} : vector<16x128xf32>, vector<16x128xf32>, vector<16x16xf32> -> vector<16x16xf32>
    %17 = arith.addf %16, %4 : vector<16x16xf32>
    %cst_11 = arith.constant dense<0xFF800000> : vector<16xf32>
    %18 = vector.multi_reduction <maximumf>, %17, %cst_11 [1] : vector<16x16xf32> to vector<16xf32>
    %19 = vector.shape_cast %18 : vector<16xf32> to vector<16x1xf32>
    %20 = vector.broadcast %19 : vector<16x1xf32> to vector<16x16xf32>
    %21 = arith.subf %17, %20 : vector<16x16xf32>
    %22 = math.exp %21 : vector<16x16xf32>
    %cst_12 = arith.constant dense<0.000000e+00> : vector<16xf32>
    %23 = vector.multi_reduction <add>, %22, %cst_12 [1] : vector<16x16xf32> to vector<16xf32>
    %24 = vector.shape_cast %23 : vector<16xf32> to vector<16x1xf32>
    %25 = tpu.reciprocal %24 {approx = true} : vector<16x1xf32> -> vector<16x1xf32>
    %26 = vector.broadcast %25 : vector<16x1xf32> to vector<16x16xf32>
    %27 = arith.mulf %22, %26 : vector<16x16xf32>
    %cst_13 = arith.constant dense<0.000000e+00> : vector<16x128xf32>
    %28 = tpu.matmul %27, %15, %cst_13 {dimension_numbers = #tpu.dot_dimension_numbers<[1], [0], [0], [1], [0, 0, 1, 1], [], []>} : vector<16x16xf32>, vector<16x128xf32>, vector<16x128xf32> -> vector<16x128xf32>
    %29 = arith.truncf %28 : vector<16x128xf32> to vector<16x128xbf16>
    %c0_14 = arith.constant 0 : index
    %c0_15 = arith.constant 0 : index
    %30 = vector.load %arg17[%c0_14, %c0_15] : memref<16x256xbf16, #tpu.memory_space<vmem>>, vector<16x128xbf16>
    tpu.vector_store %arg17[%c0_14, %c0_15], %29 {strides = array<i32>} : memref<16x256xbf16, #tpu.memory_space<vmem>>, vector<16x128xbf16>,
    %31 = vector.extract_strided_slice %12 {offsets = [0, 384], sizes = [16, 128], strides = [1, 1]} : vector<16x768xf32> to vector<16x128xf32>
    %32 = vector.extract_strided_slice %12 {offsets = [0, 512], sizes = [16, 128], strides = [1, 1]} : vector<16x768xf32> to vector<16x128xf32>
    %33 = vector.extract_strided_slice %12 {offsets = [0, 640], sizes = [16, 128], strides = [1, 1]} : vector<16x768xf32> to vector<16x128xf32>
    %cst_16 = arith.constant dense<0.000000e+00> : vector<16x16xf32>
    %34 = tpu.matmul %31, %32, %cst_16 {dimension_numbers = #tpu.dot_dimension_numbers<[1], [1], [0], [0], [0, 0, 1, 0], [], []>} : vector<16x128xf32>, vector<16x128xf32>, vector<16x16xf32> -> vector<16x16xf32>
    %35 = arith.addf %34, %4 : vector<16x16xf32>
    %cst_17 = arith.constant dense<0xFF800000> : vector<16xf32>
    %36 = vector.multi_reduction <maximumf>, %35, %cst_17 [1] : vector<16x16xf32> to vector<16xf32>
    %37 = vector.shape_cast %36 : vector<16xf32> to vector<16x1xf32>
    %38 = vector.broadcast %37 : vector<16x1xf32> to vector<16x16xf32>
    %39 = arith.subf %35, %38 : vector<16x16xf32>
    %40 = math.exp %39 : vector<16x16xf32>
    %cst_18 = arith.constant dense<0.000000e+00> : vector<16xf32>
    %41 = vector.multi_reduction <add>, %40, %cst_18 [1] : vector<16x16xf32> to vector<16xf32>
    %42 = vector.shape_cast %41 : vector<16xf32> to vector<16x1xf32>
    %43 = tpu.reciprocal %42 {approx = true} : vector<16x1xf32> -> vector<16x1xf32>
    %44 = vector.broadcast %43 : vector<16x1xf32> to vector<16x16xf32>
    %45 = arith.mulf %40, %44 : vector<16x16xf32>
    %cst_19 = arith.constant dense<0.000000e+00> : vector<16x128xf32>
    %46 = tpu.matmul %45, %33, %cst_19 {dimension_numbers = #tpu.dot_dimension_numbers<[1], [0], [0], [1], [0, 0, 1, 1], [], []>} : vector<16x16xf32>, vector<16x128xf32>, vector<16x128xf32> -> vector<16x128xf32>
    %47 = arith.truncf %46 : vector<16x128xf32> to vector<16x128xbf16>
    %c0_20 = arith.constant 0 : index
    %c128 = arith.constant 128 : index
    %48 = vector.load %arg17[%c0_20, %c128] : memref<16x256xbf16, #tpu.memory_space<vmem>>, vector<16x128xbf16>
    tpu.vector_store %arg17[%c0_20, %c128], %47 {strides = array<i32>} : memref<16x256xbf16, #tpu.memory_space<vmem>>, vector<16x128xbf16>,
    %c0_21 = arith.constant 0 : index
    %c0_22 = arith.constant 0 : index
    %49 = vector.load %arg17[%c0_21, %c0_22] : memref<16x256xbf16, #tpu.memory_space<vmem>>, vector<16x256xbf16>
    %c0_23 = arith.constant 0 : index
    %c0_24 = arith.constant 0 : index
    %c0_25 = arith.constant 0 : index
    %50 = vector.load %arg5[%c0_23, %c0_24, %c0_25] : memref<1x256x64xbf16, #tpu.memory_space<vmem>>, vector<1x256x64xbf16>
    %51 = vector.shape_cast %50 : vector<1x256x64xbf16> to vector<256x64xbf16>
    %cst_26 = arith.constant dense<0.000000e+00> : vector<16x64xf32>
    %52 = tpu.matmul %49, %51, %cst_26 {dimension_numbers = #tpu.dot_dimension_numbers<[1], [0], [0], [1], [0, 0, 1, 1], [], []>} : vector<16x256xbf16>, vector<256x64xbf16>, vector<16x64xf32> -> vector<16x64xf32>
    %c0_27 = arith.constant 0 : index
    %c0_28 = arith.constant 0 : index
    %c0_29 = arith.constant 0 : index
    %53 = vector.load %arg6[%c0_27, %c0_28, %c0_29] : memref<1x1x64xf32, #tpu.memory_space<vmem>>, vector<1x1x64xf32>
    %54 = vector.shape_cast %53 : vector<1x1x64xf32> to vector<1x64xf32>
    %55 = vector.broadcast %54 : vector<1x64xf32> to vector<16x64xf32>
    %56 = arith.addf %52, %55 : vector<16x64xf32>
    %57 = arith.addf %56, %3 : vector<16x64xf32>
    %c0_30 = arith.constant 0 : index
    %c0_31 = arith.constant 0 : index
    %c0_32 = arith.constant 0 : index
    %58 = vector.load %arg7[%c0_30, %c0_31, %c0_32] : memref<1x2x64xf32, #tpu.memory_space<vmem>>, vector<1x2x64xf32>
    %59 = vector.shape_cast %58 : vector<1x2x64xf32> to vector<2x64xf32>
    %60 = vector.extract_strided_slice %59 {offsets = [0, 0], sizes = [1, 64], strides = [1, 1]} : vector<2x64xf32> to vector<1x64xf32>
    %61 = vector.extract_strided_slice %59 {offsets = [1, 0], sizes = [1, 64], strides = [1, 1]} : vector<2x64xf32> to vector<1x64xf32>
    %cst_33 = arith.constant dense<0.000000e+00> : vector<16xf32>
    %62 = vector.multi_reduction <add>, %57, %cst_33 [1] : vector<16x64xf32> to vector<16xf32>
    %63 = vector.shape_cast %62 : vector<16xf32> to vector<16x1xf32>
    %cst_34 = arith.constant 6.400000e+01 : f32
    %64 = vector.broadcast %cst_34 : f32 to vector<16x1xf32>
    %65 = arith.divf %63, %64 : vector<16x1xf32>
    %66 = vector.broadcast %65 : vector<16x1xf32> to vector<16x64xf32>
    %67 = arith.subf %57, %66 : vector<16x64xf32>
    %68 = arith.mulf %67, %67 : vector<16x64xf32>
    %cst_35 = arith.constant dense<0.000000e+00> : vector<16xf32>
    %69 = vector.multi_reduction <add>, %68, %cst_35 [1] : vector<16x64xf32> to vector<16xf32>
    %70 = vector.shape_cast %69 : vector<16xf32> to vector<16x1xf32>
    %cst_36 = arith.constant 6.400000e+01 : f32
    %71 = vector.broadcast %cst_36 : f32 to vector<16x1xf32>
    %72 = arith.divf %70, %71 : vector<16x1xf32>
    %73 = vector.broadcast %65 : vector<16x1xf32> to vector<16x64xf32>
    %74 = arith.subf %57, %73 : vector<16x64xf32>
    %cst_37 = arith.constant 9.99999996E-13 : f32
    %75 = vector.broadcast %cst_37 : f32 to vector<16x1xf32>
    %76 = arith.addf %72, %75 : vector<16x1xf32>
    %77 = math.rsqrt %76 : vector<16x1xf32>
    %78 = vector.broadcast %77 : vector<16x1xf32> to vector<16x64xf32>
    %79 = arith.mulf %74, %78 : vector<16x64xf32>
    %80 = vector.broadcast %60 : vector<1x64xf32> to vector<16x64xf32>
    %81 = arith.mulf %79, %80 : vector<16x64xf32>
    %82 = vector.broadcast %61 : vector<1x64xf32> to vector<16x64xf32>
    %83 = arith.addf %81, %82 : vector<16x64xf32>
    %84 = arith.truncf %83 : vector<16x64xf32> to vector<16x64xbf16>
    %c0_38 = arith.constant 0 : index
    %c0_39 = arith.constant 0 : index
    %c0_40 = arith.constant 0 : index
    %85 = vector.load %arg8[%c0_38, %c0_39, %c0_40] : memref<1x64x128xbf16, #tpu.memory_space<vmem>>, vector<1x64x128xbf16>
    %86 = vector.shape_cast %85 : vector<1x64x128xbf16> to vector<64x128xbf16>
    %cst_41 = arith.constant dense<0.000000e+00> : vector<16x128xf32>
    %87 = tpu.matmul %84, %86, %cst_41 {dimension_numbers = #tpu.dot_dimension_numbers<[1], [0], [0], [1], [0, 0, 1, 1], [], []>} : vector<16x64xbf16>, vector<64x128xbf16>, vector<16x128xf32> -> vector<16x128xf32>
    %c0_42 = arith.constant 0 : index
    %c0_43 = arith.constant 0 : index
    %c0_44 = arith.constant 0 : index
    %88 = vector.load %arg9[%c0_42, %c0_43, %c0_44] : memref<1x1x128xf32, #tpu.memory_space<vmem>>, vector<1x1x128xf32>
    %89 = vector.shape_cast %88 : vector<1x1x128xf32> to vector<1x128xf32>
    %90 = vector.broadcast %89 : vector<1x128xf32> to vector<16x128xf32>
    %91 = arith.addf %87, %90 : vector<16x128xf32>
    %92 = arith.mulf %91, %91 : vector<16x128xf32>
    %93 = arith.mulf %91, %92 : vector<16x128xf32>
    %cst_45 = arith.constant 4.471500e-02 : f32
    %94 = vector.broadcast %cst_45 : f32 to vector<16x128xf32>
    %95 = arith.mulf %94, %93 : vector<16x128xf32>
    %96 = arith.addf %91, %95 : vector<16x128xf32>
    %cst_46 = arith.constant 0.797884583 : f32
    %97 = vector.broadcast %cst_46 : f32 to vector<16x128xf32>
    %98 = arith.mulf %97, %96 : vector<16x128xf32>
    %99 = math.tanh %98 : vector<16x128xf32>
    %cst_47 = arith.constant 1.000000e+00 : f32
    %100 = vector.broadcast %cst_47 : f32 to vector<16x128xf32>
    %101 = arith.addf %100, %99 : vector<16x128xf32>
    %cst_48 = arith.constant 5.000000e-01 : f32
    %102 = vector.broadcast %cst_48 : f32 to vector<16x128xf32>
    %103 = arith.mulf %102, %101 : vector<16x128xf32>
    %104 = arith.mulf %91, %103 : vector<16x128xf32>
    %105 = arith.truncf %104 : vector<16x128xf32> to vector<16x128xbf16>
    %c0_49 = arith.constant 0 : index
    %c0_50 = arith.constant 0 : index
    %c0_51 = arith.constant 0 : index
    %106 = vector.load %arg10[%c0_49, %c0_50, %c0_51] : memref<1x128x64xbf16, #tpu.memory_space<vmem>>, vector<1x128x64xbf16>
    %107 = vector.shape_cast %106 : vector<1x128x64xbf16> to vector<128x64xbf16>
    %cst_52 = arith.constant dense<0.000000e+00> : vector<16x64xf32>
    %108 = tpu.matmul %105, %107, %cst_52 {dimension_numbers = #tpu.dot_dimension_numbers<[1], [0], [0], [1], [0, 0, 1, 1], [], []>} : vector<16x128xbf16>, vector<128x64xbf16>, vector<16x64xf32> -> vector<16x64xf32>
    %c0_53 = arith.constant 0 : index
    %c0_54 = arith.constant 0 : index
    %c0_55 = arith.constant 0 : index
    %109 = vector.load %arg11[%c0_53, %c0_54, %c0_55] : memref<1x1x64xf32, #tpu.memory_space<vmem>>, vector<1x1x64xf32>
    %110 = vector.shape_cast %109 : vector<1x1x64xf32> to vector<1x64xf32>
    %111 = vector.broadcast %110 : vector<1x64xf32> to vector<16x64xf32>
    %112 = arith.addf %108, %111 : vector<16x64xf32>
    %113 = arith.addf %112, %83 : vector<16x64xf32>
    %c0_56 = arith.constant 0 : index
    %c0_57 = arith.constant 0 : index
    %c0_58 = arith.constant 0 : index
    %114 = vector.load %arg12[%c0_56, %c0_57, %c0_58] : memref<1x2x64xf32, #tpu.memory_space<vmem>>, vector<1x2x64xf32>
    %115 = vector.shape_cast %114 : vector<1x2x64xf32> to vector<2x64xf32>
    %116 = vector.extract_strided_slice %115 {offsets = [0, 0], sizes = [1, 64], strides = [1, 1]} : vector<2x64xf32> to vector<1x64xf32>
    %117 = vector.extract_strided_slice %115 {offsets = [1, 0], sizes = [1, 64], strides = [1, 1]} : vector<2x64xf32> to vector<1x64xf32>
    %cst_59 = arith.constant dense<0.000000e+00> : vector<16xf32>
    %118 = vector.multi_reduction <add>, %113, %cst_59 [1] : vector<16x64xf32> to vector<16xf32>
    %119 = vector.shape_cast %118 : vector<16xf32> to vector<16x1xf32>
    %cst_60 = arith.constant 6.400000e+01 : f32
    %120 = vector.broadcast %cst_60 : f32 to vector<16x1xf32>
    %121 = arith.divf %119, %120 : vector<16x1xf32>
    %122 = vector.broadcast %121 : vector<16x1xf32> to vector<16x64xf32>
    %123 = arith.subf %113, %122 : vector<16x64xf32>
    %124 = arith.mulf %123, %123 : vector<16x64xf32>
    %cst_61 = arith.constant dense<0.000000e+00> : vector<16xf32>
    %125 = vector.multi_reduction <add>, %124, %cst_61 [1] : vector<16x64xf32> to vector<16xf32>
    %126 = vector.shape_cast %125 : vector<16xf32> to vector<16x1xf32>
    %cst_62 = arith.constant 6.400000e+01 : f32
    %127 = vector.broadcast %cst_62 : f32 to vector<16x1xf32>
    %128 = arith.divf %126, %127 : vector<16x1xf32>
    %129 = vector.broadcast %121 : vector<16x1xf32> to vector<16x64xf32>
    %130 = arith.subf %113, %129 : vector<16x64xf32>
    %cst_63 = arith.constant 9.99999996E-13 : f32
    %131 = vector.broadcast %cst_63 : f32 to vector<16x1xf32>
    %132 = arith.addf %128, %131 : vector<16x1xf32>
    %133 = math.rsqrt %132 : vector<16x1xf32>
    %134 = vector.broadcast %133 : vector<16x1xf32> to vector<16x64xf32>
    %135 = arith.mulf %130, %134 : vector<16x64xf32>
    %136 = vector.broadcast %116 : vector<1x64xf32> to vector<16x64xf32>
    %137 = arith.mulf %135, %136 : vector<16x64xf32>
    %138 = vector.broadcast %117 : vector<1x64xf32> to vector<16x64xf32>
    %139 = arith.addf %137, %138 : vector<16x64xf32>
    %c0_64 = arith.constant 0 : index
    %c0_65 = arith.constant 0 : index
    %140 = vector.load %arg16[%c0_64, %c0_65] : memref<16x64xf32, #tpu.memory_space<vmem>>, vector<16x64xf32>
    tpu.vector_store %arg16[%c0_64, %c0_65], %139 {strides = array<i32>} : memref<16x64xf32, #tpu.memory_space<vmem>>, vector<16x64xf32>,
    %c1_i32 = arith.constant 1 : i32
    %141 = arith.cmpi eq, %arg0, %c1_i32 : i32
    %142 = arith.extui %141 : i1 to i32
    %c0_i32_66 = arith.constant 0 : i32
    %143 = arith.cmpi ne, %142, %c0_i32_66 : i32
    scf.if %143 {
      %c0_67 = arith.constant 0 : index
      %c0_68 = arith.constant 0 : index
      %144 = tpu.strided_load %arg16[%c0_67, %c0_68] {strides = array<i32: 8, 1>} : memref<16x64xf32, #tpu.memory_space<vmem>>, vector<2x64xf32>
      %145 = arith.truncf %144 : vector<2x64xf32> to vector<2x64xbf16>
      %c0_69 = arith.constant 0 : index
      %c0_70 = arith.constant 0 : index
      %146 = vector.load %arg13[%c0_69, %c0_70] : memref<64x128xbf16, #tpu.memory_space<vmem>>, vector<64x128xbf16>
      %cst_71 = arith.constant dense<0.000000e+00> : vector<2x128xf32>
      %147 = tpu.matmul %145, %146, %cst_71 {dimension_numbers = #tpu.dot_dimension_numbers<[1], [0], [0], [1], [0, 0, 1, 1], [], []>} : vector<2x64xbf16>, vector<64x128xbf16>, vector<2x128xf32> -> vector<2x128xf32>
      %c0_72 = arith.constant 0 : index
      %c0_73 = arith.constant 0 : index
      %148 = vector.load %arg14[%c0_72, %c0_73] : memref<1x128xf32, #tpu.memory_space<vmem>>, vector<1x128xf32>
      %149 = vector.broadcast %148 : vector<1x128xf32> to vector<2x128xf32>
      %150 = arith.addf %147, %149 : vector<2x128xf32>
      %c0_74 = arith.constant 0 : index
      %c0_75 = arith.constant 0 : index
      %151 = vector.load %arg15[%c0_74, %c0_75] : memref<2x128xf32, #tpu.memory_space<vmem>>, vector<2x128xf32>
      tpu.vector_store %arg15[%c0_74, %c0_75], %150 {strides = array<i32>} : memref<2x128xf32, #tpu.memory_space<vmem>>, vector<2x128xf32>,
    } else {
    }
    return
  }
  func.func @transform_1(%arg0: i32) -> (i32, i32) {
    %c0_i32 = arith.constant 0 : i32
    %c0_i32_0 = arith.constant 0 : i32
    %c0_i32_1 = arith.constant 0 : i32
    return %c0_i32, %c0_i32_0 : i32, i32
  }
  func.func @transform_2(%arg0: i32) -> (i32, i32, i32) {
    %c0_i32 = arith.constant 0 : i32
    %c0_i32_0 = arith.constant 0 : i32
    %c0_i32_1 = arith.constant 0 : i32
    return %arg0, %c0_i32, %c0_i32_0 : i32, i32, i32
  }
  func.func @transform_3(%arg0: i32) -> (i32, i32, i32) {
    %c0_i32 = arith.constant 0 : i32
    %c0_i32_0 = arith.constant 0 : i32
    %c0_i32_1 = arith.constant 0 : i32
    return %arg0, %c0_i32, %c0_i32_0 : i32, i32, i32
  }
  func.func @transform_4(%arg0: i32) -> (i32, i32, i32) {
    %c0_i32 = arith.constant 0 : i32
    %c0_i32_0 = arith.constant 0 : i32
    %c0_i32_1 = arith.constant 0 : i32
    return %arg0, %c0_i32, %c0_i32_0 : i32, i32, i32
  }
  func.func @transform_5(%arg0: i32) -> (i32, i32, i32) {
    %c0_i32 = arith.constant 0 : i32
    %c0_i32_0 = arith.constant 0 : i32
    %c0_i32_1 = arith.constant 0 : i32
    return %arg0, %c0_i32, %c0_i32_0 : i32, i32, i32
  }
  func.func @transform_6(%arg0: i32) -> (i32, i32, i32) {
    %c0_i32 = arith.constant 0 : i32
    %c0_i32_0 = arith.constant 0 : i32
    %c0_i32_1 = arith.constant 0 : i32
    return %arg0, %c0_i32, %c0_i32_0 : i32, i32, i32
  }
  func.func @transform_7(%arg0: i32) -> (i32, i32, i32) {
    %c0_i32 = arith.constant 0 : i32
    %c0_i32_0 = arith.constant 0 : i32
    %c0_i32_1 = arith.constant 0 : i32
    return %arg0, %c0_i32, %c0_i32_0 : i32, i32, i32
  }
  func.func @transform_8(%arg0: i32) -> (i32, i32, i32) {
    %c0_i32 = arith.constant 0 : i32
    %c0_i32_0 = arith.constant 0 : i32
    %c0_i32_1 = arith.constant 0 : i32
    return %arg0, %c0_i32, %c0_i32_0 : i32, i32, i32
  }
  func.func @transform_9(%arg0: i32) -> (i32, i32, i32) {
    %c0_i32 = arith.constant 0 : i32
    %c0_i32_0 = arith.constant 0 : i32
    %c0_i32_1 = arith.constant 0 : i32
    return %arg0, %c0_i32, %c0_i32_0 : i32, i32, i32
  }
  func.func @transform_10(%arg0: i32) -> (i32, i32, i32) {
    %c0_i32 = arith.constant 0 : i32
    %c0_i32_0 = arith.constant 0 : i32
    %c0_i32_1 = arith.constant 0 : i32
    return %arg0, %c0_i32, %c0_i32_0 : i32, i32, i32
  }
  func.func @transform_11(%arg0: i32) -> (i32, i32, i32) {
    %c0_i32 = arith.constant 0 : i32
    %c0_i32_0 = arith.constant 0 : i32
    %c0_i32_1 = arith.constant 0 : i32
    return %arg0, %c0_i32, %c0_i32_0 : i32, i32, i32
  }
  func.func @transform_12(%arg0: i32) -> (i32, i32) {
    %c0_i32 = arith.constant 0 : i32
    %c0_i32_0 = arith.constant 0 : i32
    %c0_i32_1 = arith.constant 0 : i32
    return %c0_i32, %c0_i32_0 : i32, i32
  }
  func.func @transform_13(%arg0: i32) -> (i32, i32) {
    %c0_i32 = arith.constant 0 : i32
    %c0_i32_0 = arith.constant 0 : i32
    %c0_i32_1 = arith.constant 0 : i32
    return %c0_i32, %c0_i32_0 : i32, i32
  }
  func.func @transform_14(%arg0: i32) -> (i32, i32) {
    %c0_i32 = arith.constant 0 : i32
    %c0_i32_0 = arith.constant 0 : i32
    %c0_i32_1 = arith.constant 0 : i32
    return %c0_i32, %c0_i32_0 : i32, i32
  }
}

</mosaic_0001>

<bundles_post_ra>
// kernel: distilbert_query_encoder.1
= control target key start
LH: loop header
LB: loop body
LE: loop exit
PB: predicated region body
PF: predicated region fallthrough
CT: control target
= control target key end

     0   :  { %s2792_s0 = inlined_call_operand.vmem [shape: f32[16,64], index: 0, kind: input, shape index: {}]   ;;  %s2793_s1 = inlined_call_operand.vmem [shape: f32[16,16], index: 1, kind: input, shape index: {}]   ;;  %s2794_s2 = inlined_call_operand.vmem [shape: bf16[2,64,768], index: 2, kind: input, shape index: {}]   ;;  %s2795_s3 = inlined_call_operand.vmem [shape: f32[2,1,768], index: 3, kind: input, shape index: {}]   ;;  %s2796_s4 = inlined_call_operand.vmem [shape: bf16[2,256,64], index: 4, kind: input, shape index: {}]   ;;  %s2797_s5 = inlined_call_operand.vmem [shape: f32[2,1,64], index: 5, kind: input, shape index: {}]   ;;  %s2798_s6 = inlined_call_operand.vmem [shape: f32[2,2,64], index: 6, kind: input, shape index: {}]   ;;  %s2799_s7 = inlined_call_operand.vmem [shape: bf16[2,64,128], index: 7, kind: input, shape index: {}]   ;;  %s2800_s8 = inlined_call_operand.vmem [shape: f32[2,1,128], index: 8, kind: input, shape index: {}]   ;;  %s2801_s9 = inlined_call_operand.vmem [shape: bf16[2,128,64], index: 9, kind: input, shape index: {}]   ;;  %s2802_s10 = inlined_call_operand.vmem [shape: f32[2,1,64], index: 10, kind: input, shape index: {}]   ;;  %s2803_s11 = inlined_call_operand.vmem [shape: f32[2,2,64], index: 11, kind: input, shape index: {}]   ;;  %s2804_s12 = inlined_call_operand.vmem [shape: bf16[64,128], index: 12, kind: input, shape index: {}]   ;;  %s2805_s13 = inlined_call_operand.vmem [shape: f32[1,128], index: 13, kind: input, shape index: {}]   ;;  %s2806_s14 = inlined_call_operand.hbm [shape: f32[2,128], index: 14, kind: output, shape index: {}]  }
   0x1   :  { %2811 = sst [smem:[#allocation11_spill]] %s2793_s1 }
   0x2   :  { %2812 = sst [smem:[#allocation12_spill]] %s2794_s2 }
   0x3   :  { %2813 = sst [smem:[#allocation13_spill]] %s2795_s3 }
   0x4   :  { %2814 = sst [smem:[#allocation14_spill]] %s2796_s4 }
   0x5   :  { %2815 = sst [smem:[#allocation15_spill]] %s2804_s12 }
   0x6   :  { %2816 = sst [smem:[#allocation16_spill]] %s2805_s13 }
   0x7   :  { %2817 = sst [smem:[#allocation17_spill]] %s2806_s14 }
   0x8   :  { %19 = vsyncpa [#allocation6], 0  ;;  %s2510_s29 = smov 0  }
   0x9 LB: > { %2818 = sst [smem:[#allocation10_spill]] %s2427_s29  ;;  %s2516_s30 = sadd.s32 4294967295, %s2427_s29   ;;  %s2427_s29 = sphi %s2510_s29, %s25_s29  }
   0xa   : > { %p2037_p0 = scmp.ge.s32.totalorder %s2427_s29, 1  ;;  %p465_p1 = scmp.lt.s32.totalorder %s2427_s29, 3 }
   0xc   : > { %p466_p2 = pnand %p2037_p0, %p465_p1 }
   0xd   : > { %p540_p3 = scmp.lt.s32.totalorder (!%p466_p2), %s2516_s30, 1  ;;  %s2819_s4 = sld [smem:[#allocation14_spill]] (!%p466_p2) }
   0xe   : > { %469 = sbr.rel (%p466_p2) target bundleno = 3140 (0xc44), region = 72  ;;  %s2820_s2 = sld [smem:[#allocation12_spill]] (!%p466_p2) }
   0xf   : > { %s2821_s3 = sld [smem:[#allocation13_spill]] (!%p466_p2)  ;;  %p2047_p4 = scmp.ne.s32.totalorder (!%p466_p2), %s2516_s30, 0 }
  0x15   : > { %s2522_s15 = scalar_select %p540_p3, %s2516_s30, 1 }
  0x16   : > { %v618_v0 = vld [vmem:[%s2792_s0] sm:$0xff] (!%p2047_p4)  ;;  %v620_v1 = vld [vmem:[%s2792_s0 + $0x8] sm:$0xff] (!%p2047_p4) }
  0x17   : > { %s2271_s16 = smul.u32 192, %s2522_s15  ;;  %s2123_s17 = sshll.u32 %s2522_s15, 7  ;;  %619 = vst [vmem:[#allocation2] sm:$0xff] (!%p2047_p4), %v618_v0  ;;  %621 = vst [vmem:[#allocation2 + $0x8] sm:$0xff] (!%p2047_p4), %v620_v1 }
  0x18   : > { %s2272_s18 = smul.u32 6, %s2522_s15  ;;  %s2530_s21 = scalar_lea.vmem %s2819_s4, %s2123_s17 }
  0x19   : > { %s2535_s24 = scalar_lea.vmem %s2820_s2, %s2271_s16  ;;  %s2041_s13 = sshll.u32 %s2522_s15, 1 }
  0x1a   : > { %s2544_s14 = scalar_lea.vmem %s2821_s3, %s2272_s18  ;;  %s2550_s17 = scalar_lea.vmem %s2798_s6, %s2041_s13 }
  0x1b   : > { %s2124_s19 = sshll.u32 %s2522_s15, 5  ;;  %s568_s26 = scalar_lea.vmem %s2800_s8, %s2522_s15 }
  0x1c   : > { %s2556_s16 = scalar_lea.vmem %s2799_s7, %s2124_s19  ;;  %s2125_s27 = sshll.u32 %s2522_s15, 6 }
  0x1d   : > { %s576_s28 = scalar_lea.vmem %s2802_s10, %s2522_s15  ;;  %s2570_s1 = scalar_lea.vmem %s2801_s9, %s2125_s27 }
  0x1e   : > { %s2575_s20 = scalar_lea.vmem %s2803_s11, %s2041_s13  ;;  %585 = sbr.rel (%p2047_p4) target bundleno = 40 (0x28), region = 76 }
  0x25   : > { %629 = vsyncadd [#allocation4], 256 }
  0x26   : > { %2419 = dma.done.wait [#allocation4], 256 }
  0x27   : > { %2420 = vsyncadd [#allocation4], 4294967040 }
  0x28 PF: > { %v2293_v2 = vld [vmem:[%s2535_s24 + $0x4] ss:$24 sps:$4 sm:$0xff]   ;;  %v2295_v3 = vld [vmem:[%s2535_s24] ss:$24 sps:$4 sm:$0xff]   ;;  %v2429_v4 = vmov 0   ;;  %v2599_v17 = vld [vmem:[#allocation2 + $0x8] sm:$0xff]  ;;  %v664_v22 = vlaneseq  ;;  %s2823_s29 = scalar_lea.vmem %s2797_s5, %s2522_s15 }
  0x29   : > { %850 = vmatprep.mubr.bf16.mxu0 %v2429_v4  ;;  %893 = vmatprep.mubr.bf16.mxu1 %v2429_v4  ;;  %v2296_v5 = vld [vmem:[%s2535_s24 + $0x34] ss:$24 sps:$4 sm:$0xff]   ;;  %v2298_v6 = vld [vmem:[%s2535_s24 + $0x30] ss:$24 sps:$4 sm:$0xff]   ;;  %v2299_v7 = vld [vmem:[%s2535_s24 + $0x64] ss:$24 sps:$4 sm:$0xff]  }
  0x2a   : > { %818 = vmatprep.subr.bf16.mxu0 %v2293_v2  ;;  %v2301_v8 = vld [vmem:[%s2535_s24 + $0x60] ss:$24 sps:$4 sm:$0xff]   ;;  %v2305_v9 = vld [vmem:[%s2535_s24 + $0xc] ss:$24 sps:$4 sm:$0xff]   ;;  %v2308_v12 = vld [vmem:[%s2535_s24 + $0x3c] ss:$24 sps:$4 sm:$0xff]  }
  0x2b   : > { %819 = vmatpush1.bf16.msra.mxu0 %v2295_v3  ;;  %v2307_v10 = vld [vmem:[%s2535_s24 + $0x8] ss:$24 sps:$4 sm:$0xff]   ;;  %v2302_v11 = vld [vmem:[%s2535_s24 + $0x94] ss:$24 sps:$4 sm:$0xff]   ;;  %861 = vmatprep.subr.bf16.mxu1 %v2305_v9  ;;  %v2310_v15 = vld [vmem:[%s2535_s24 + $0x38] ss:$24 sps:$4 sm:$0xff]  }
  0x2c   : > { %820 = vmatprep.subr.bf16.mxu0 %v2296_v5  ;;  %v2304_v13 = vld [vmem:[%s2535_s24 + $0x90] ss:$24 sps:$4 sm:$0xff]   ;;  %v2595_v14 = vld [vmem:[#allocation2] sm:$0xff]  ;;  %862 = vmatpush1.bf16.msra.mxu1 %v2307_v10  ;;  %v2314_v19 = vld [vmem:[%s2535_s24 + $0x9c] ss:$24 sps:$4 sm:$0xff]   ;;  %vm814_vm0 = vcmask 523264  }
  0x2d   : > { %863 = vmatprep.subr.bf16.mxu1 %v2308_v12  ;;  %v2311_v16 = vld [vmem:[%s2535_s24 + $0x6c] ss:$24 sps:$4 sm:$0xff]   ;;  %v2313_v18 = vld [vmem:[%s2535_s24 + $0x68] ss:$24 sps:$4 sm:$0xff]   ;;  %v637_v20 = vpack.c.bf16 %v2599_v17, %v2595_v14  ;;  %v2316_v21 = vld [vmem:[%s2535_s24 + $0x98] ss:$24 sps:$4 sm:$0xff]  }
  0x2e   : > { %v2608_v23 = vshrl.u32 %v664_v22, 7  ;;  %v2614_v25 = vld [vmem:[%s2544_s14] sm:$0x3f]  ;;  %v2317_v47 = vld [vmem:[%s2535_s24 + $0x10] ss:$24 sps:$4 sm:$0xff]   ;;  %s2822_s4 = sld [smem:[#allocation11_spill]] }
  0x2f   : > { %821 = vmatpush1.bf16.msra.mxu0 %v2298_v6  ;;  %v2319_v48 = vld [vmem:[%s2535_s24 + $0x14] ss:$24 sps:$4 sm:$0xff]   ;;  %v2322_v49 = vld [vmem:[%s2535_s24 + $0x44] ss:$24 sps:$4 sm:$0xff]   ;;  %v2320_v50 = vld [vmem:[%s2535_s24 + $0x40] ss:$24 sps:$4 sm:$0xff]  }
  0x30   : > { %822 = vmatprep.subr.bf16.mxu0 %v2299_v7  ;;  %864 = vmatpush1.bf16.msra.mxu1 %v2310_v15  ;;  %v2611_v24 = vsub.s32 0, %v2608_v23  ;;  %v2617_v26 = vsub.s32 1, %v2608_v23  ;;  %v674_v28 = vsub.s32 2, %v2608_v23  ;;  %v2325_v51 = vld [vmem:[%s2535_s24 + $0x74] ss:$24 sps:$4 sm:$0xff]   ;;  %vm1022_vm1 = vcmask 130048  }
  0x31   : > { %865 = vmatprep.subr.bf16.mxu1 %v2311_v16  ;;  %v2323_v52 = vld [vmem:[%s2535_s24 + $0x70] ss:$24 sps:$4 sm:$0xff]   ;;  %v2328_v53 = vld [vmem:[%s2535_s24 + $0xa4] ss:$24 sps:$4 sm:$0xff]   ;;  %v2326_v54 = vld [vmem:[%s2535_s24 + $0xa0] ss:$24 sps:$4 sm:$0xff]  }
  0x32   : > { %v667_v27 = vrot.slane %v2614_v25, %v2611_v24  ;;  %v671_v30 = vrot.slane %v2614_v25, %v2617_v26  ;;  %v675_v35 = vrot.slane %v2614_v25, %v674_v28  ;;  %v682_v9 = vsub.s32 4, %v2608_v23  ;;  %p2111_p5 = scmp.ne.s32.totalorder %s2516_s30, 1 }
  0x33   : > { %823 = vmatpush1.bf16.msra.mxu0 %v2301_v8  ;;  %vm2431_vm2 = vmmov 0   ;;  %vm2433_vm3 = vmmov (!%p2111_p5), 0   ;;  %s2825_s3 = sld [smem:[#allocation16_spill]] (!%p2111_p5) }
  0x34   : > { %824 = vmatprep.subr.bf16.mxu0 %v2302_v11  ;;  %866 = vmatpush1.bf16.msra.mxu1 %v2313_v18  ;;  %v2641_v55 = vld [vmem:[%s2822_s4] sm:$0xff]  ;;  %v636_v57 = vld [vmem:[%s2822_s4 + $0x8] sm:$0xff]  ;;  %v686_v11 = vsub.s32 5, %v2608_v23 }
  0x35   : > { %867 = vmatprep.subr.bf16.mxu1 %v2314_v19 }
  0x36   : > { %v687_v15 = vrot.slane %v2614_v25, %v686_v11  ;;  %v2342_v11 = vld [vmem:[%s2530_s21 + $0x30] sm:$0xff]  }
  0x37   : > { %825 = vmatpush1.bf16.msra.mxu0 %v2304_v13  ;;  %v683_v13 = vrot.slane %v2614_v25, %v682_v9  ;;  %v2340_v9 = vld [vmem:[%s2530_s21 + $0x28] sm:$0xff]  }
  0x38   : > { %868 = vmatpush1.bf16.msra.mxu1 %v2316_v21  ;;  %904 = vmatprep.subr.bf16.mxu0 %v2319_v48 }
  0x3a   : > { %2072 = vmatmul.mubr.msk.bf16.vlgmr.msra.gmra.mrb[0].mxu0 %vm814_vm0, %v637_v20 }
  0x3b   : > { %936 = vmatprep.mubr.bf16.mxu0 %v2429_v4  ;;  %2073 = vmatmul.mubr.msk.bf16.vlgmr.msra.gmra.mrb[0].mxu1 %vm814_vm0, %v637_v20 }
  0x3c   : > { %905 = vmatpush1.bf16.msra.mxu0 %v2317_v47 }
  0x3d   : > { %906 = vmatprep.subr.bf16.mxu0 %v2322_v49 }
  0x40   : > { %907 = vmatpush1.bf16.msra.mxu0 %v2320_v50 }
  0x41   : > { %908 = vmatprep.subr.bf16.mxu0 %v2325_v51 }
  0x44   : > { %909 = vmatpush1.bf16.msra.mxu0 %v2323_v52 }
  0x45   : > { %910 = vmatprep.subr.bf16.mxu0 %v2328_v53 }
  0x48   : > { %911 = vmatpush1.bf16.msra.mxu0 %v2326_v54 }
  0x4b   : > { %2074 = vmatmul.mubr.msk.bf16.vlgmr.msra.gmra.mrb[4].mxu0 %vm814_vm0, %v637_v20 }
 0x10d   : > { %v852_v29 = vpop.f32.mrb[0].mxu0 }
 0x10e   : > { %v853_v31 = vadd.f32 %v852_v29, %v667_v27  ;;  %v854_v32 = vpop.f32.mrb[1].mxu0  ;;  %v895_v39 = vpop.f32.mrb[0].mxu1 }
 0x10f   : > { %v856_v33 = vpop.f32.mrb[2].mxu0  ;;  %v855_v36 = vadd.f32 %v854_v32, %v671_v30  ;;  %v896_v40 = vadd.f32 %v895_v39, %v675_v35  ;;  %v2625_v41 = vpop.f32.mrb[1].mxu1 }
 0x110   : > { %v858_v34 = vpop.f32.mrb[3].mxu0  ;;  %2187 = vmatprep.mubr.f32.mxu1 %v853_v31  ;;  %v899_v42 = vpop.f32.mrb[2].mxu1  ;;  %v857_v46 = vadd.f32 %v856_v33, %v667_v27  ;;  %v678_v31 = vsub.s32 3, %v2608_v23 }
 0x111   : > { %v859_v37 = vadd.f32 %v858_v34, %v671_v30  ;;  %v900_v43 = vadd.f32 %v899_v42, %v675_v35  ;;  %v2627_v44 = vpop.f32.mrb[3].mxu1 }
 0x112   : > { %v679_v34 = vrot.slane %v2614_v25, %v678_v31 }
 0x113   : > { %v2255_v38 = vpack.c.bf16 %v859_v37, %v855_v36  ;;  %v2259_v45 = vpack.c.bf16 %v900_v43, %v896_v40 }
 0x114   : > { %v898_v37 = vadd.f32 %v2625_v41, %v679_v34 }
 0x115   : > { %2256 = vmatprep.subr.bf16.mxu1 %v2255_v38 }
 0x116   : > { %2258 = vmatpush3.bf16.xpose.msra.mxu1 %v2255_v38  ;;  %v902_v38 = vadd.f32 %v2627_v44, %v679_v34 }
 0x117   : > { %2260 = vmatprep.subr.bf16.mxu1 %v2259_v45 }
 0x11d   : > { %2188 = vmatmul.mubr.f32.vlgmr.msra.gmra.mrb[4].mxu1 %v857_v46 }
 0x11e   : > { %2262 = vmatpush3.bf16.msra.mxu1 %v2259_v45  ;;  %v938_v10 = vpop.f32.mrb[4].mxu0 }
 0x11f   : > { %v940_v12 = vpop.f32.mrb[5].mxu0  ;;  %v939_v19 = vadd.f32 %v938_v10, %v683_v13  ;;  %v2341_v10 = vld [vmem:[%s2530_s21 + $0x70] sm:$0xff]  }
 0x120   : > { %v942_v16 = vpop.f32.mrb[6].mxu0  ;;  %v941_v20 = vadd.f32 %v940_v12, %v687_v15  ;;  %v2343_v12 = vld [vmem:[%s2530_s21 + $0x78] sm:$0xff]  }
 0x121   : > { %v944_v18 = vpop.f32.mrb[7].mxu0  ;;  %v943_v21 = vadd.f32 %v942_v16, %v683_v13  ;;  %v2344_v13 = vld [vmem:[%s2530_s21 + $0x38] sm:$0xff]  }
 0x122   : > { %v945_v22 = vadd.f32 %v944_v18, %v687_v15 }
 0x123   : > { %v2263_v27 = vpack.c.bf16 %v943_v21, %v939_v19 }
 0x124   : > { %v2267_v28 = vpack.c.bf16 %v945_v22, %v941_v20  ;;  %v2079_v20 = vld [vmem:[%s2823_s29] ss:$0 sm:$0xff] }
 0x125   : > { %2264 = vmatprep.subr.bf16.mxu1 %v2263_v27 }
 0x1f0   : > { %v2189_v56 = vpop.f32.mrb[4].mxu1 }
 0x1f1   : > { %v1013_v58 = vpop.f32.mrb[5].mxu1  ;;  %v1019_v60 = vadd.f32 %v2189_v56, %v636_v57  ;;  %v2329_v56 = vld [vmem:[%s2530_s21 + $0x40] sm:$0xff]  }
 0x1f2   : > { %v1014_v59 = vadd.f32 %v1013_v58, %v2641_v55 }
 0x1f3   : > { %v1026_v62 = vsel %vm1022_vm1, %v1019_v60, -inf }
 0x1f4   : > { %v1023_v61 = vsel %vm1022_vm1, %v1014_v59, -inf }
 0x1f5   : > { %1024 = vmax.xlane.f32.xlu0 %v1023_v61 }
 0x1f9   : > { %1027 = vmax.xlane.f32.xlu0 %v1026_v62  ;;  %v2330_v62 = vld [vmem:[%s2530_s21] sm:$0xff]  }
 0x282   : > { %v1025_v63 = vpop.xlane.xlu0 %1024 }
 0x283   : > { %v1029_v0 = vsub.f32 %v1014_v59, %v1025_v63 }
 0x285   : > { %v1031_v1 = vmul.f32 1.442695, %v1029_v0  ;;  %v2331_v0 = vld [vmem:[%s2530_s21 + $0x48] sm:$0xff]  }
 0x286   : > { %v1028_v2 = vpop.xlane.xlu0 %1027 }
 0x287   : > { %2357 = vpow2.f32 %v1031_v1  ;;  %v1030_v3 = vsub.f32 %v1019_v60, %v1028_v2  ;;  %v2332_v1 = vld [vmem:[%s2530_s21 + $0x8] sm:$0xff]   ;;  %v2333_v2 = vld [vmem:[%s2530_s21 + $0x50] sm:$0xff]  }
 0x289   : > { %v1033_v4 = vmul.f32 1.442695, %v1030_v3  ;;  %v2334_v3 = vld [vmem:[%s2530_s21 + $0x10] sm:$0xff]  }
 0x28b   : > { %2359 = vpow2.f32 %v1033_v4  ;;  %v2335_v4 = vld [vmem:[%s2530_s21 + $0x58] sm:$0xff]  }
 0x291   : > { %v2358_v5 = vpop.eup %2357 }
 0x292   : > { %v1035_v6 = vsel %vm1022_vm1, %v2358_v5, 0.0 }
 0x293   : > { %1036 = vadd.xlane.f32.xlu1 %v1035_v6  ;;  %v2337_v6 = vld [vmem:[%s2530_s21 + $0x60] sm:$0xff]  }
 0x295   : > { %v2360_v7 = vpop.eup %2359 }
 0x296   : > { %v1038_v8 = vsel %vm1022_vm1, %v2360_v7, 0.0 }
 0x297   : > { %1039 = vadd.xlane.f32.xlu1 %v1038_v8  ;;  %v2339_v8 = vld [vmem:[%s2530_s21 + $0x68] sm:$0xff]  }
 0x320   : > { %v1037_v29 = vpop.xlane.xlu1 %1036 }
 0x321   : > { %2361 = vrcp.f32 %v1037_v29 }
 0x324   : > { %v1040_v30 = vpop.xlane.xlu1 %1039 }
 0x325   : > { %2363 = vrcp.f32 %v1040_v30 }
 0x32b   : > { %v2362_v32 = vpop.eup %2361 }
 0x32c   : > { %v1043_v33 = vmul.f32 %v2362_v32, %v2358_v5  ;;  %v2336_v5 = vld [vmem:[%s2530_s21 + $0x18] sm:$0xff]  }
 0x32e   : > { %2194 = vmatprep.mubr.msk.f32.mxu1 %vm1022_vm1, %v1043_v33 }
 0x32f   : > { %v2364_v35 = vpop.eup %2363 }
 0x330   : > { %v1044_v36 = vmul.f32 %v2364_v35, %v2360_v7  ;;  %v2338_v7 = vld [vmem:[%s2530_s21 + $0x20] sm:$0xff]  }
 0x332   : > { %2195 = vmatmul.mubr.msk.f32.vlgmr.msra.gmra.mrb[6].mxu1 %vm1022_vm1, %v1044_v36 }
 0x333   : > { %2266 = vmatpush3.bf16.xpose.msra.mxu1 %v2263_v27  ;;  %2201 = vmatprep.mubr.f32.mxu1 %v898_v37 }
 0x334   : > { %2268 = vmatprep.subr.bf16.mxu1 %v2267_v28 }
 0x33a   : > { %2202 = vmatmul.mubr.f32.vlgmr.msra.gmra.mrb[8].mxu1 %v902_v38 }
 0x33b   : > { %2270 = vmatpush3.bf16.msra.mxu1 %v2267_v28 }
 0x33c   : > { %2142 = vmatprep.subr.bf16.mxu1 %v2329_v56 }
 0x405   : > { %v2661_v23 = vpop.f32.mrb[6].mxu1 }
 0x406   : > { %v2663_v39 = vpop.f32.mrb[7].mxu1 }
 0x407   : > { %v1126_v25 = vpack.c.bf16 %v2661_v23, %v2663_v39 }
 0x40d   : > { %v2203_v40 = vpop.f32.mrb[8].mxu1 }
 0x40e   : > { %v1200_v42 = vadd.f32 %v2203_v40, %v636_v57  ;;  %v1194_v43 = vpop.f32.mrb[9].mxu1 }
 0x40f   : > { %v1195_v41 = vadd.f32 %v1194_v43, %v2641_v55  ;;  %v2345_v43 = vld [vmem:[%s2556_s16] sm:$0xff]  }
 0x410   : > { %v1206_v45 = vsel %vm1022_vm1, %v1200_v42, -inf }
 0x411   : > { %1207 = vmax.xlane.f32.xlu1 %v1206_v45  ;;  %v1203_v46 = vsel %vm1022_vm1, %v1195_v41, -inf  ;;  %v2346_v45 = vld [vmem:[%s2556_s16 + $0x8] sm:$0xff]  }
 0x412   : > { %1204 = vmax.xlane.f32.xlu0 %v1203_v46  ;;  %v2347_v46 = vld [vmem:[%s2556_s16 + $0x10] sm:$0xff]  }
 0x49e   : > { %v1208_v44 = vpop.xlane.xlu1 %1207 }
 0x49f   : > { %v1210_v47 = vsub.f32 %v1200_v42, %v1208_v44  ;;  %v1205_v48 = vpop.xlane.xlu0 %1204  ;;  %v2348_v44 = vld [vmem:[%s2556_s16 + $0x18] sm:$0xff]  }
 0x4a0   : > { %v1209_v49 = vsub.f32 %v1195_v41, %v1205_v48  ;;  %v2430_v41 = vmov 0.0  }
 0x4a1   : > { %v1213_v50 = vmul.f32 1.442695, %v1210_v47  ;;  %2211 = vmatprep.subr.bf16.mxu0 %v2430_v41  ;;  %2219 = vmatprep.mubr.msk.bf16.mxu0 %vm2431_vm2, %v2430_v41 }
 0x4a2   : > { %v1211_v51 = vmul.f32 1.442695, %v1209_v49  ;;  %2212 = vmatpush3.bf16.msra.mxu0 %v2345_v43 }
 0x4a3   : > { %2365 = vpow2.f32 %v1213_v50  ;;  %2213 = vmatprep.subr.bf16.mxu0 %v2430_v41 }
 0x4a4   : > { %2367 = vpow2.f32 %v1211_v51 }
 0x4a6   : > { %2214 = vmatpush3.bf16.msra.mxu0 %v2346_v45 }
 0x4a7   : > { %2215 = vmatprep.subr.bf16.mxu0 %v2430_v41 }
 0x4aa   : > { %2216 = vmatpush3.bf16.msra.mxu0 %v2347_v46 }
 0x4ab   : > { %2217 = vmatprep.subr.bf16.mxu0 %v2430_v41 }
 0x4ad   : > { %v2366_v52 = vpop.eup %2365 }
 0x4ae   : > { %v2368_v53 = vpop.eup %2367  ;;  %v1218_v54 = vsel %vm1022_vm1, %v2366_v52, 0.0  ;;  %2218 = vmatpush3.bf16.msra.mxu0 %v2348_v44 }
 0x4af   : > { %1219 = vadd.xlane.f32.xlu1 %v1218_v54  ;;  %v1215_v55 = vsel %vm1022_vm1, %v2368_v53, 0.0  ;;  %2223 = vmatprep.subr.bf16.mxu0 %v2430_v41 }
 0x4b0   : > { %1216 = vadd.xlane.f32.xlu0 %v1215_v55 }
 0x53c   : > { %v1220_v57 = vpop.xlane.xlu1 %1219 }
 0x53d   : > { %2369 = vrcp.f32 %v1220_v57  ;;  %v1217_v58 = vpop.xlane.xlu0 %1216 }
 0x53e   : > { %2371 = vrcp.f32 %v1217_v58 }
 0x547   : > { %v2370_v59 = vpop.eup %2369 }
 0x548   : > { %v2372_v60 = vpop.eup %2371  ;;  %v1224_v63 = vmul.f32 %v2370_v59, %v2366_v52 }
 0x549   : > { %v1223_v61 = vmul.f32 %v2372_v60, %v2368_v53  ;;  %v1488_v53 = vld [vmem:[%s2550_s17] sm:$0x3] }
 0x54a   : > { %v1519_v54 = vrot.slane %v1488_v53, %v2611_v24  ;;  %v1525_v58 = vrot.slane %v1488_v53, %v2617_v26 }
 0x54b   : > { %2208 = vmatprep.mubr.msk.f32.mxu1 %vm1022_vm1, %v1223_v61 }
 0x54c   : > { %2209 = vmatmul.mubr.msk.f32.vlgmr.msra.gmra.mrb[10].mxu1 %vm1022_vm1, %v1224_v63 }
 0x54d   : > { %2143 = vmatpush3.bf16.msra.mxu1 %v2330_v62 }
 0x54e   : > { %2144 = vmatprep.subr.bf16.mxu1 %v2331_v0 }
 0x551   : > { %2145 = vmatpush3.bf16.msra.mxu1 %v2332_v1  ;;  %v2349_v1 = vld [vmem:[%s2570_s1] sm:$0xff]  }
 0x552   : > { %2146 = vmatprep.subr.bf16.mxu1 %v2333_v2  ;;  %v2350_v2 = vld [vmem:[%s2570_s1 + $0x8] sm:$0xff]  }
 0x555   : > { %2147 = vmatpush3.bf16.msra.mxu1 %v2334_v3  ;;  %v2351_v3 = vld [vmem:[%s2570_s1 + $0x10] sm:$0xff]  }
 0x556   : > { %2148 = vmatprep.subr.bf16.mxu1 %v2335_v4  ;;  %v2352_v4 = vld [vmem:[%s2570_s1 + $0x18] sm:$0xff]  }
 0x559   : > { %2149 = vmatpush3.bf16.msra.mxu1 %v2336_v5  ;;  %v2353_v5 = vld [vmem:[%s2570_s1 + $0x20] sm:$0xff]  }
 0x55a   : > { %2150 = vmatprep.subr.bf16.mxu1 %v2337_v6  ;;  %v2354_v6 = vld [vmem:[%s2570_s1 + $0x28] sm:$0xff]  }
 0x55d   : > { %2151 = vmatpush3.bf16.msra.mxu1 %v2338_v7  ;;  %v2355_v7 = vld [vmem:[%s2570_s1 + $0x30] sm:$0xff]  }
 0x55e   : > { %2152 = vmatprep.subr.bf16.mxu1 %v2339_v8  ;;  %v2356_v8 = vld [vmem:[%s2570_s1 + $0x38] sm:$0xff]  }
 0x561   : > { %2153 = vmatpush3.bf16.msra.mxu1 %v2340_v9  ;;  %v2096_v9 = vld [vmem:[%s568_s26] ss:$0 sm:$0xff] }
 0x562   : > { %2154 = vmatprep.subr.bf16.mxu1 %v2341_v10 }
 0x565   : > { %2155 = vmatpush3.bf16.msra.mxu1 %v2342_v11 }
 0x566   : > { %2156 = vmatprep.subr.bf16.mxu1 %v2343_v12 }
 0x569   : > { %2157 = vmatpush3.bf16.msra.mxu1 %v2344_v13 }
 0x61f   : > { %v2210_v15 = vpop.f32.mrb[10].mxu1 }
 0x620   : > { %v1297_v16 = vpop.f32.mrb[11].mxu1 }
 0x621   : > { %v1306_v18 = vpack.c.bf16 %v2210_v15, %v1297_v16 }
 0x623   : > { %1477 = vmatprep.mubr.bf16.mxu1 %v1306_v18 }
 0x624   : > { %1478 = vmatmul.mubr.bf16.vlgmr.msra.gmra.mrb[12].mxu1 %v1126_v25 }
 0x6f7   : > { %v2158_v19 = vpop.f32.mrb[12].mxu1 }
 0x6f8   : > { %v2159_v21 = vpop.f32.mrb[13].mxu1 }
 0x6f9   : > { %v2160_v22 = vadd.f32 %v2159_v21, %v2158_v19  ;;  %v2161_v27 = vpop.f32.mrb[14].mxu1 }
 0x6fa   : > { %v2162_v28 = vpop.f32.mrb[15].mxu1 }
 0x6fb   : > { %v1480_v29 = vadd.f32 %v2160_v22, %v2079_v20  ;;  %v2163_v30 = vadd.f32 %v2162_v28, %v2161_v27 }
 0x6fd   : > { %v1483_v31 = vadd.f32 %v2163_v30, %v2079_v20  ;;  %v1486_v32 = vadd.f32 %v1480_v29, %v2595_v14 }
 0x6ff   : > { %v1489_v33 = vsel %vm814_vm0, %v1486_v32, 0.0  ;;  %v1487_v34 = vadd.f32 %v1483_v31, %v2599_v17 }
 0x700   : > { %1490 = vadd.xlane.f32.xlu0 %v1489_v33 }
 0x701   : > { %v1492_v35 = vsel %vm814_vm0, %v1487_v34, 0.0 }
 0x702   : > { %1493 = vadd.xlane.f32.xlu1 %v1492_v35 }
 0x78d   : > { %v1491_v36 = vpop.xlane.xlu0 %1490 }
 0x78e   : > { %v1496_v37 = vmul.f32 0.015625, %v1491_v36 }
 0x78f   : > { %v1494_v38 = vpop.xlane.xlu1 %1493 }
 0x790   : > { %v1498_v23 = vsub.f32 %v1486_v32, %v1496_v37  ;;  %v1497_v39 = vmul.f32 0.015625, %v1494_v38 }
 0x792   : > { %v1499_v25 = vsub.f32 %v1487_v34, %v1497_v39  ;;  %v1500_v40 = vmul.f32 %v1498_v23, %v1498_v23 }
 0x794   : > { %v1502_v14 = vsel %vm814_vm0, %v1500_v40, 0.0  ;;  %v1501_v42 = vmul.f32 %v1499_v25, %v1499_v25 }
 0x795   : > { %1503 = vadd.xlane.f32.xlu0 %v1502_v14 }
 0x796   : > { %v1505_v17 = vsel %vm814_vm0, %v1501_v42, 0.0 }
 0x797   : > { %1506 = vadd.xlane.f32.xlu1 %v1505_v17 }
 0x822   : > { %v1504_v47 = vpop.xlane.xlu0 %1503 }
 0x823   : > { %v1508_v48 = vmul.f32 0.015625, %v1504_v47 }
 0x824   : > { %v1507_v49 = vpop.xlane.xlu1 %1506 }
 0x825   : > { %v1510_v50 = vadd.f32 1e-12, %v1508_v48  ;;  %v1509_v51 = vmul.f32 0.015625, %v1507_v49 }
 0x827   : > { %2373 = vrsqrt.f32 %v1510_v50  ;;  %v1511_v52 = vadd.f32 1e-12, %v1509_v51 }
 0x829   : > { %2375 = vrsqrt.f32 %v1511_v52 }
 0x831   : > { %v2374_v55 = vpop.eup %2373 }
 0x832   : > { %v1514_v56 = vmul.f32 %v2374_v55, %v1498_v23 }
 0x833   : > { %v2376_v57 = vpop.eup %2375 }
 0x834   : > { %v1520_v59 = vmul.f32 %v1519_v54, %v1514_v56  ;;  %v1515_v60 = vmul.f32 %v2376_v57, %v1499_v25  ;;  %v2102_v25 = vld [vmem:[%s576_s28] ss:$0 sm:$0xff]  ;;  %s2824_s28 = sld [smem:[#allocation15_spill]] (!%p2111_p5) }
 0x836   : > { %v1521_v61 = vmul.f32 %v1519_v54, %v1515_v60  ;;  %v2712_v62 = vadd.f32 %v1525_v58, %v1520_v59 }
 0x838   : > { %v2714_v63 = vadd.f32 %v1525_v58, %v1521_v61 }
 0x83a   : > { %v1528_v0 = vpack.c.bf16 %v2714_v63, %v2712_v62 }
 0x83c   : > { %2220 = vmatmul.mubr.msk.bf16.vlgmr.msra.gmra.mrb[8].mxu0 %vm814_vm0, %v1528_v0  ;;  %v1745_v0 = vld [vmem:[%s2575_s20] sm:$0x3] }
 0x83d   : > { %2239 = vmatprep.mubr.msk.bf16.mxu0 %vm2431_vm2, %v2430_v41  ;;  %2224 = vmatpush3.bf16.msra.mxu0 %v2349_v1  ;;  %v1775_v1 = vrot.slane %v1745_v0, %v2611_v24  ;;  %v2385_v24 = vld [vmem:[%s2824_s28] sm:$0xff] (!%p2111_p5)  }
 0x83e   : > { %2225 = vmatprep.subr.bf16.mxu0 %v2430_v41 }
 0x841   : > { %2226 = vmatpush3.bf16.msra.mxu0 %v2350_v2 }
 0x842   : > { %2227 = vmatprep.subr.bf16.mxu0 %v2430_v41 }
 0x845   : > { %2228 = vmatpush3.bf16.msra.mxu0 %v2351_v3  ;;  %v1781_v3 = vrot.slane %v1745_v0, %v2617_v26  ;;  %v2386_v26 = vld [vmem:[%s2824_s28 + $0x8] sm:$0xff] (!%p2111_p5)  }
 0x846   : > { %2229 = vmatprep.subr.bf16.mxu0 %v2430_v41 }
 0x849   : > { %2230 = vmatpush3.bf16.msra.mxu0 %v2352_v4 }
 0x84a   : > { %2231 = vmatprep.subr.bf16.mxu0 %v2430_v41 }
 0x84d   : > { %2232 = vmatpush3.bf16.msra.mxu0 %v2353_v5 }
 0x84e   : > { %2233 = vmatprep.subr.bf16.mxu0 %v2430_v41 }
 0x851   : > { %2234 = vmatpush3.bf16.msra.mxu0 %v2354_v6 }
 0x852   : > { %2235 = vmatprep.subr.bf16.mxu0 %v2430_v41 }
 0x855   : > { %2236 = vmatpush3.bf16.msra.mxu0 %v2355_v7 }
 0x856   : > { %2237 = vmatprep.subr.bf16.mxu0 %v2430_v41 }
 0x859   : > { %2238 = vmatpush3.bf16.msra.mxu0 %v2356_v8 }
 0x90f   : > { %v1605_v10 = vpop.f32.mrb[8].mxu0 }
 0x910   : > { %v1606_v11 = vadd.f32 %v2096_v9, %v1605_v10  ;;  %v2221_v12 = vpop.f32.mrb[9].mxu0 }
 0x911   : > { %v1608_v13 = vpop.f32.mrb[10].mxu0  ;;  %v2387_v12 = vld [vmem:[%s2824_s28 + $0x10] sm:$0xff] (!%p2111_p5)  }
 0x912   : > { %v1612_v15 = vmul.f32 %v1606_v11, %v1606_v11  ;;  %v1609_v16 = vadd.f32 %v2096_v9, %v1608_v13  ;;  %v2222_v18 = vpop.f32.mrb[11].mxu0  ;;  %v2388_v13 = vld [vmem:[%s2824_s28 + $0x18] sm:$0xff] (!%p2111_p5)  }
 0x913   : > { %v2112_v18 = vld [vmem:[%s2825_s3] ss:$0 sm:$0xff] (!%p2111_p5) }
 0x914   : > { %v1614_v19 = vmul.f32 %v1612_v15, %v1606_v11  ;;  %v1613_v20 = vmul.f32 %v1609_v16, %v1609_v16 }
 0x916   : > { %v1616_v21 = vmul.f32 0.044715, %v1614_v19  ;;  %v1615_v22 = vmul.f32 %v1613_v20, %v1609_v16 }
 0x918   : > { %v1618_v27 = vadd.f32 %v1616_v21, %v1606_v11  ;;  %v1617_v28 = vmul.f32 0.044715, %v1615_v22 }
 0x91a   : > { %v1620_v29 = vmul.f32 0.7978846, %v1618_v27  ;;  %v1619_v30 = vadd.f32 %v1617_v28, %v1609_v16 }
 0x91c   : > { %2377 = vtanh.f32 %v1620_v29  ;;  %v1621_v31 = vmul.f32 0.7978846, %v1619_v30 }
 0x91e   : > { %2379 = vtanh.f32 %v1621_v31 }
 0x926   : > { %v2378_v32 = vpop.eup %2377 }
 0x927   : > { %v1624_v33 = vadd.f32 1.0, %v2378_v32 }
 0x928   : > { %v2380_v34 = vpop.eup %2379 }
 0x929   : > { %v1626_v35 = vmul.f32 0.5, %v1624_v33  ;;  %v1625_v36 = vadd.f32 1.0, %v2380_v34 }
 0x92b   : > { %v1627_v37 = vmul.f32 0.5, %v1625_v36  ;;  %v1628_v38 = vmul.f32 %v1626_v35, %v1606_v11  ;;  %v2432_v11 = vmov (!%p2111_p5), 0.0  }
 0x92c   : > { %2243 = vmatprep.subr.bf16.mxu0 (!%p2111_p5), %v2432_v11 }
 0x92d   : > { %v1629_v23 = vmul.f32 %v1627_v37, %v1609_v16 }
 0x92f   : > { %v1630_v39 = vpack.c.bf16 %v1629_v23, %v1628_v38 }
 0x931   : > { %2240 = vmatmul.mubr.bf16.vlgmr.msra.gmra.mrb[12].mxu0 %v1630_v39 }
 0x932   : > { %2244 = vmatpush3.bf16.msra.mxu0 (!%p2111_p5), %v2385_v24  ;;  %2251 = vmatprep.mubr.msk.bf16.mxu0 (!%p2111_p5), %vm2433_vm3, %v2432_v11 }
 0x933   : > { %2245 = vmatprep.subr.bf16.mxu0 (!%p2111_p5), %v2432_v11 }
 0x936   : > { %2246 = vmatpush3.bf16.msra.mxu0 (!%p2111_p5), %v2386_v26 }
 0x937   : > { %2247 = vmatprep.subr.bf16.mxu0 (!%p2111_p5), %v2432_v11 }
 0x93a   : > { %2248 = vmatpush3.bf16.msra.mxu0 (!%p2111_p5), %v2387_v12 }
 0x93b   : > { %2249 = vmatprep.subr.bf16.mxu0 (!%p2111_p5), %v2432_v11 }
 0x93e   : > { %2250 = vmatpush3.bf16.msra.mxu0 (!%p2111_p5), %v2388_v13 }
 0xa04   : > { %v1736_v40 = vpop.f32.mrb[12].mxu0 }
 0xa05   : > { %v1737_v14 = vadd.f32 %v2102_v25, %v1736_v40  ;;  %v2241_v42 = vpop.f32.mrb[13].mxu0 }
 0xa06   : > { %v1739_v17 = vpop.f32.mrb[14].mxu0 }
 0xa07   : > { %v1740_v43 = vadd.f32 %v2102_v25, %v1739_v17  ;;  %v2242_v41 = vpop.f32.mrb[15].mxu0  ;;  %v1743_v45 = vadd.f32 %v1737_v14, %v2712_v62 }
 0xa09   : > { %v1746_v46 = vsel %vm814_vm0, %v1743_v45, 0.0  ;;  %v1744_v44 = vadd.f32 %v1740_v43, %v2714_v63 }
 0xa0a   : > { %1747 = vadd.xlane.f32.xlu0 %v1746_v46 }
 0xa0b   : > { %v1749_v47 = vsel %vm814_vm0, %v1744_v44, 0.0 }
 0xa0c   : > { %1750 = vadd.xlane.f32.xlu1 %v1749_v47 }
 0xa97   : > { %v1748_v48 = vpop.xlane.xlu0 %1747 }
 0xa98   : > { %v1752_v49 = vmul.f32 0.015625, %v1748_v48 }
 0xa99   : > { %v1751_v50 = vpop.xlane.xlu1 %1750 }
 0xa9a   : > { %v1754_v51 = vsub.f32 %v1743_v45, %v1752_v49  ;;  %v1753_v52 = vmul.f32 0.015625, %v1751_v50 }
 0xa9c   : > { %v1755_v53 = vsub.f32 %v1744_v44, %v1753_v52  ;;  %v1756_v54 = vmul.f32 %v1754_v51, %v1754_v51 }
 0xa9e   : > { %v1758_v55 = vsel %vm814_vm0, %v1756_v54, 0.0  ;;  %v1757_v56 = vmul.f32 %v1755_v53, %v1755_v53 }
 0xa9f   : > { %1759 = vadd.xlane.f32.xlu0 %v1758_v55 }
 0xaa0   : > { %v1761_v57 = vsel %vm814_vm0, %v1757_v56, 0.0 }
 0xaa1   : > { %1762 = vadd.xlane.f32.xlu1 %v1761_v57 }
 0xb2c   : > { %v1760_v58 = vpop.xlane.xlu0 %1759 }
 0xb2d   : > { %v1764_v59 = vmul.f32 0.015625, %v1760_v58 }
 0xb2e   : > { %v1763_v60 = vpop.xlane.xlu1 %1762 }
 0xb2f   : > { %v1766_v61 = vadd.f32 1e-12, %v1764_v59  ;;  %v1765_v62 = vmul.f32 0.015625, %v1763_v60 }
 0xb31   : > { %2381 = vrsqrt.f32 %v1766_v61  ;;  %v1767_v63 = vadd.f32 1e-12, %v1765_v62 }
 0xb33   : > { %2383 = vrsqrt.f32 %v1767_v63 }
 0xb3b   : > { %v2382_v2 = vpop.eup %2381 }
 0xb3c   : > { %v1770_v4 = vmul.f32 %v2382_v2, %v1754_v51 }
 0xb3d   : > { %v2384_v5 = vpop.eup %2383 }
 0xb3e   : > { %v1776_v6 = vmul.f32 %v1775_v1, %v1770_v4  ;;  %v1771_v7 = vmul.f32 %v2384_v5, %v1755_v53  ;;  %1789 = sbr.rel (%p2111_p5) target bundleno = 3109 (0xc25), region = 114 }
 0xb40   : > { %v1782_v8 = vadd.f32 %v1781_v3, %v1776_v6  ;;  %v1777_v9 = vmul.f32 %v1775_v1, %v1771_v7 }
 0xb42   : > { %1784 = vst.msk [vmem:[#allocation2] sm:$0xff] %vm814_vm0, %v1782_v8  ;;  %v1783_v10 = vadd.f32 %v1781_v3, %v1777_v9 }
 0xb44   : > { %1785 = vst.msk [vmem:[#allocation2 + $0x8] sm:$0xff] %vm814_vm0, %v1783_v10 }
 0xb4b   : > { %v1790_v15 = vld [vmem:[#allocation2] ss:$8 sm:$0x3] }
 0xb4c   : > { %v1791_v16 = vpack.c.bf16 %v1790_v15, %v1790_v15 }
 0xb4e   : > { %2252 = vmatmul.mubr.msk.bf16.vlgmr.msra.gmra.mrb[0].mxu0 %vm814_vm0, %v1791_v16 }
 0xc21   : > { %v1868_v19 = vpop.f32.mrb[0].mxu0 }
 0xc22   : > { %v1869_v20 = vadd.f32 %v2112_v18, %v1868_v19  ;;  %v2253_v21 = vpop.f32.mrb[1].mxu0 }
 0xc23   : > { %v1871_v22 = vpop.f32.mrb[2].mxu0 }
 0xc24   : > { %1874 = vst [vmem:[#allocation5] sm:$0x3] %v1869_v20  ;;  %v2254_v27 = vpop.f32.mrb[3].mxu0 }
 0xc25 PF: > { %p2277_p6 = scmp.eq.s32.totalorder %s2516_s30, 1  ;;  %s2434_s13 = smov [#allocation5]  }
 0xc26   : > { %s1882_s14 = sshll.u32 %s2434_s13, 4  ;;  %s1883_s14 = int_to_ptr.vmem [resolvable:$true] %s1882_s14 }
 0xc27   : > { %s2389_s24 = scalar_lea.vmem %s1883_s14, 32  ;;  %p2396_p10 = scmp.lt.s32.totalorder %s1883_s14, %s1883_s14 }
 0xc28   : > { %p2390_p7 = scmp.ne.s32.totalorder %s1883_s14, %s2389_s24  ;;  %p2397_p11 = scmp.lt.s32.totalorder %s2389_s24, %s2389_s24 }
 0xc2a   : > { %p2391_p8 = pnand %p2390_p7, %p2277_p6  ;;  %p2398_p12 = por %p2397_p11, %p2396_p10 }
 0xc2c   : > { %p2392_p9 = pneg %p2391_p8 }
 0xc2e   : > { %p2399_p13 = pnand %p2398_p12, %p2392_p9 }
 0xc30   : > { %2402 = shalt.err (!%p2399_p13)
}
 0xc31   : > { %s2826_s21 = sld [smem:[#allocation17_spill]] }
 0xc37   : > { %s2403_s17 = scalar_lea.hbm %s2826_s21, 32 }
 0xc38   : > { %p2404_p0 = scmp.ne.s32.totalorder %s2826_s21, %s2403_s17  ;;  %p2409_p3 = scmp.lt.u32.totalorder %s2403_s17, %s2826_s21 }
 0xc3a   : > { %p2405_p1 = pnand %p2404_p0, %p2277_p6 }
 0xc3c   : > { %p2406_p2 = pneg %p2405_p1 }
 0xc3e   : > { %p2411_p4 = pnand %p2409_p3, %p2406_p2 }
 0xc40   : > { %2414 = shalt.err (!%p2411_p4)
}
 0xc41   : > { %2274 = dma.vmem_to_hbm [thread:$0]  (%p2277_p6), %s1883_s14, 32, %s2826_s21, [#allocation6]  }
 0xc42   : > { %2422 = dma.done.wait (%p2277_p6), [#allocation6], 32  }
 0xc43   : > { %2424 = vsyncadd (%p2277_p6), [#allocation6], 4294967264 }
 0xc44 PF: > { %s2827_s20 = sld [smem:[#allocation10_spill]] }
 0xc4a   : > { %s25_s29 = sadd.s32 1, %s2827_s20  }
 0xc4b   : > { %p22_p5 = scmp.ge.s32.totalorder %s25_s29, 4  }
 0xc4d   :  { %24 = sbr.rel (!%p22_p5) target bundleno = 9 (0x9), region = 176 }
 0xc54   :  { %1895 = vsyncpa [#allocation6], 1 }
 0xc55   :  { %1897 = vsyncpa [#allocation6 + $0x1], 1 }
 0xc56   :  { %1898 = vsyncmov [#allocation4] }
 0xc59   :  { %s1899_s19 = vpop.sfrf %1898 }
 0xc5a   :  { %p2122_p7 = scmp.ne.s32.totalorder %s1899_s19, 0 }
 0xc5c   :  { %1903 = shalt.err (%p2122_p7)  }

</bundles_post_ra>
